<compile_context>
chip_gen: v7x
topology: tpu7x:2x2x1
jax: 0.10.0
libtpu: 0.0.40
codegen_flags: <defaults>
</compile_context>

<pallas_src>
import jax
import jax.numpy as jnp
from jax.experimental import pallas as pl
from jax.experimental.pallas import tpu as pltpu

DIMS = 384              # per-embedding width (`dims = 384` in NLI_BERT.py)
HIDDEN = 256
NUM_CLASSES = 3
OUT_PAD = 128           # pad class dim to one full lane group (lane-dense stores)
TM_MAX = 512            # max batch tile (raised from 256 per perf review)


def _round_up(x, m):
    return -(-x // m) * m


def _num_tensorcores():
    """Best-effort TensorCore-per-chip query; defaults to 1 (safe heuristic)."""
    try:
        info = pltpu.get_tpu_info()
    except Exception:
        return 1
    for attr in ("num_cores", "core_count", "num_tensorcores", "tensorcore_count"):
        v = getattr(info, attr, None)
        if isinstance(v, int) and v > 0:
            return v
    return 1


_NUM_TC = _num_tensorcores()


def _choose_tm(batch):
    """Pick the batch tile (multiple of 16 for bf16 sublane packing).

    Single-TC chips (v5e/v6e): largest tile up to TM_MAX (extra grid steps are
    pure overhead there).  2-TC chips (v7x): split medium batches into >=2 grid
    steps so dimension_semantics=("parallel",) can shard across both cores.
    """
    b16 = max(16, _round_up(batch, 16))
    if _NUM_TC > 1 and 32 < b16 < 2 * TM_MAX:
        return min(TM_MAX, _round_up(-(-b16 // 2), 16))   # ~2 tiles
    return min(TM_MAX, b16)


def classifier_kernel(c_ref, e_ref, w1c_ref, w1e_ref, b1_ref, w2_ref, b2_ref,
                      out_ref):
    """Fused MLP head for one batch tile.

    relu(concat(c, e) @ W1 + b1) @ W2 + b2, with the concat expressed as
    c @ W1[:384] + e @ W1[384:].  Inputs are cast to bf16 in-kernel (no
    wrapper-side cast pass); all matmuls accumulate in f32 on the MXU.
    """
    c = c_ref[...].astype(jnp.bfloat16)
    e = e_ref[...].astype(jnp.bfloat16)
    h = jnp.dot(c, w1c_ref[...], preferred_element_type=jnp.float32)
    h = h + jnp.dot(e, w1e_ref[...], preferred_element_type=jnp.float32)
    h = jnp.maximum(h + b1_ref[...], 0.0)                       # f32 (TM, 256)
    logits = jnp.dot(h.astype(w2_ref.dtype), w2_ref[...],
                     preferred_element_type=jnp.float32)
    out_ref[...] = (logits + b2_ref[...]).astype(out_ref.dtype)  # bf16 (TM, 128)


def prepare_params(w1, b1, w2, b2):
    """One-time parameter prep (hoisted out of the per-call forward).

    * W1 (768, 256) is split into claim / evidence halves (384, 256) each.
    * W2 / b2 are zero-padded from 3 to 128 output lanes.
    * Weights are cast to bf16 (matmul inputs); biases stay f32 (added to the
      f32 accumulator).
    """
    w1 = jnp.asarray(w1, jnp.float32)
    w2 = jnp.asarray(w2, jnp.float32)
    w1c = w1[:DIMS].astype(jnp.bfloat16)                        # (384, 256)
    w1e = w1[DIMS:].astype(jnp.bfloat16)                        # (384, 256)
    b1_2d = jnp.asarray(b1, jnp.float32).reshape(1, HIDDEN)
    w2_p = jnp.pad(w2, ((0, 0), (0, OUT_PAD - NUM_CLASSES))
                   ).astype(jnp.bfloat16)                       # (256, 128)
    b2_2d = jnp.pad(jnp.asarray(b2, jnp.float32),
                    ((0, OUT_PAD - NUM_CLASSES),)).reshape(1, OUT_PAD)
    return w1c, w1e, b1_2d, w2_p, b2_2d


@jax.jit
def classifier_forward(claim_embedding, evidence_embedding,
                       w1c, w1e, b1_2d, w2_p, b2_2d):
    """claim/evidence: (B, 384), any float dtype.  Returns logits (B, 3) f32."""
    B = claim_embedding.shape[0]
    tm = _choose_tm(B)                  # static under jit (shape-derived)
    grid = (pl.cdiv(B, tm),)            # partial edge tile handled by Pallas

    in_bytes = claim_embedding.dtype.itemsize
    flops = 2 * B * (2 * DIMS * HIDDEN + HIDDEN * OUT_PAD)
    bytes_accessed = (B * (2 * DIMS * in_bytes + OUT_PAD * 2)
                      + 2 * DIMS * HIDDEN * 2       # W1 halves (bf16)
                      + HIDDEN * OUT_PAD * 2        # W2 (bf16)
                      + (HIDDEN + OUT_PAD) * 4)     # biases (f32)

    out = pl.pallas_call(
        classifier_kernel,
        out_shape=jax.ShapeDtypeStruct((B, OUT_PAD), jnp.bfloat16),
        grid_spec=pltpu.PrefetchScalarGridSpec(
            num_scalar_prefetch=0,
            grid=grid,
            in_specs=[
                pl.BlockSpec((tm, DIMS), lambda i: (i, 0)),         # claim tile
                pl.BlockSpec((tm, DIMS), lambda i: (i, 0)),         # evidence tile
                pl.BlockSpec((DIMS, HIDDEN), lambda i: (0, 0)),     # W1 claim half
                pl.BlockSpec((DIMS, HIDDEN), lambda i: (0, 0)),     # W1 evidence half
                pl.BlockSpec((1, HIDDEN), lambda i: (0, 0)),        # b1
                pl.BlockSpec((HIDDEN, OUT_PAD), lambda i: (0, 0)),  # W2 (padded)
                pl.BlockSpec((1, OUT_PAD), lambda i: (0, 0)),       # b2 (padded)
            ],
            out_specs=pl.BlockSpec((tm, OUT_PAD), lambda i: (i, 0)),
        ),
        compiler_params=pltpu.CompilerParams(
            dimension_semantics=("parallel",)),
        cost_estimate=pl.CostEstimate(flops=flops, transcendentals=0,
                                      bytes_accessed=bytes_accessed),
    )(claim_embedding, evidence_embedding, w1c, w1e, b1_2d, w2_p, b2_2d)

    # Slice the lane-dense slab back to 3 logits; upcast fuses with the slice.
    return out[:, :NUM_CLASSES].astype(jnp.float32)


def init_params(key):
    """Deterministic init mimicking torch.nn.Linear (uniform +-1/sqrt(fan_in))."""
    k1, k2, k3, k4 = jax.random.split(key, 4)
    in_features = DIMS * 2
    bound1 = 1.0 / jnp.sqrt(jnp.float32(in_features))
    bound2 = 1.0 / jnp.sqrt(jnp.float32(HIDDEN))
    w1 = jax.random.uniform(k1, (in_features, HIDDEN), jnp.float32,
                            -bound1, bound1)
    b1 = jax.random.uniform(k2, (HIDDEN,), jnp.float32, -bound1, bound1)
    w2 = jax.random.uniform(k3, (HIDDEN, NUM_CLASSES), jnp.float32,
                            -bound2, bound2)
    b2 = jax.random.uniform(k4, (NUM_CLASSES,), jnp.float32, -bound2, bound2)
    return w1, b1, w2, b2


def _reference(claim, evidence, w1, b1, w2, b2):
    """Pure-JAX reference with the same bf16 quantization as the kernel."""
    f32 = lambda a: a.astype(jnp.bfloat16).astype(jnp.float32)
    x = jnp.concatenate([f32(claim), f32(evidence)], axis=1)
    h = jnp.maximum(x @ f32(w1) + b1, 0.0)
    return f32(h) @ f32(w2) + b2


if __name__ == "__main__":
    key = jax.random.PRNGKey(0)
    kp, kdata = jax.random.split(key)

    w1, b1, w2, b2 = init_params(kp)
    params = prepare_params(w1, b1, w2, b2)

    # B=8 exercises the single (partial) tile path; B=40 a non-multiple-of-16
    # batch; B=600 exercises the multi-step grid path.
    for B in (8, 40, 600):
        kc, ke = jax.random.split(jax.random.fold_in(kdata, B))
        claim = jax.random.normal(kc, (B, DIMS), jnp.float32)
        evidence = jax.random.normal(ke, (B, DIMS), jnp.float32)

        logits = classifier_forward(claim, evidence, *params)
        logits = jax.block_until_ready(logits)

        ref = _reference(claim, evidence, w1, b1, w2, b2)
        assert logits.shape == (B, NUM_CLASSES)
        assert jnp.allclose(logits, ref, atol=2e-2, rtol=2e-2)

    print("KERNEL_OK")
</pallas_src>

<mosaic_0001>
module attributes {stable_mosaic.version = 11 : i64} {
  func.func @classifier_kernel(%arg0: i32, %arg1: memref<16x384xf32, #tpu.memory_space<vmem>>, %arg2: memref<16x384xf32, #tpu.memory_space<vmem>>, %arg3: memref<384x256xbf16, #tpu.memory_space<vmem>>, %arg4: memref<384x256xbf16, #tpu.memory_space<vmem>>, %arg5: memref<1x256xf32, #tpu.memory_space<vmem>>, %arg6: memref<256x128xbf16, #tpu.memory_space<vmem>>, %arg7: memref<1x128xf32, #tpu.memory_space<vmem>>, %arg8: memref<16x128xbf16, #tpu.memory_space<vmem>>) attributes {dimension_semantics = [#tpu.dimension_semantics<parallel>], iteration_bounds = array<i64: 1>, scalar_prefetch = 0 : i64, scratch_operands = 0 : i64, tpu.core_type = #tpu.core_type<tc>, window_params = [{transform_indices = @transform_0, window_bounds = array<i64: 16, 384>}, {transform_indices = @transform_1, window_bounds = array<i64: 16, 384>}, {pipeline_mode = #tpu.pipeline_mode<synchronous>, transform_indices = @transform_2, window_bounds = array<i64: 384, 256>}, {pipeline_mode = #tpu.pipeline_mode<synchronous>, transform_indices = @transform_3, window_bounds = array<i64: 384, 256>}, {pipeline_mode = #tpu.pipeline_mode<synchronous>, transform_indices = @transform_4, window_bounds = array<i64: 1, 256>}, {pipeline_mode = #tpu.pipeline_mode<synchronous>, transform_indices = @transform_5, window_bounds = array<i64: 256, 128>}, {pipeline_mode = #tpu.pipeline_mode<synchronous>, transform_indices = @transform_6, window_bounds = array<i64: 1, 128>}, {transform_indices = @transform_7, window_bounds = array<i64: 16, 128>}]} {
    %c0 = arith.constant 0 : index
    %c0_0 = arith.constant 0 : index
    %0 = vector.load %arg1[%c0, %c0_0] : memref<16x384xf32, #tpu.memory_space<vmem>>, vector<16x384xf32>
    %1 = arith.truncf %0 : vector<16x384xf32> to vector<16x384xbf16>
    %c0_1 = arith.constant 0 : index
    %c0_2 = arith.constant 0 : index
    %2 = vector.load %arg2[%c0_1, %c0_2] : memref<16x384xf32, #tpu.memory_space<vmem>>, vector<16x384xf32>
    %3 = arith.truncf %2 : vector<16x384xf32> to vector<16x384xbf16>
    %c0_3 = arith.constant 0 : index
    %c0_4 = arith.constant 0 : index
    %4 = vector.load %arg3[%c0_3, %c0_4] : memref<384x256xbf16, #tpu.memory_space<vmem>>, vector<384x256xbf16>
    %cst = arith.constant dense<0.000000e+00> : vector<16x256xf32>
    %5 = tpu.matmul %1, %4, %cst {dimension_numbers = #tpu.dot_dimension_numbers<[1], [0], [0], [1], [0, 0, 1, 1], [], []>} : vector<16x384xbf16>, vector<384x256xbf16>, vector<16x256xf32> -> vector<16x256xf32>
    %c0_5 = arith.constant 0 : index
    %c0_6 = arith.constant 0 : index
    %6 = vector.load %arg4[%c0_5, %c0_6] : memref<384x256xbf16, #tpu.memory_space<vmem>>, vector<384x256xbf16>
    %cst_7 = arith.constant dense<0.000000e+00> : vector<16x256xf32>
    %7 = tpu.matmul %3, %6, %cst_7 {dimension_numbers = #tpu.dot_dimension_numbers<[1], [0], [0], [1], [0, 0, 1, 1], [], []>} : vector<16x384xbf16>, vector<384x256xbf16>, vector<16x256xf32> -> vector<16x256xf32>
    %8 = arith.addf %5, %7 : vector<16x256xf32>
    %c0_8 = arith.constant 0 : index
    %c0_9 = arith.constant 0 : index
    %9 = vector.load %arg5[%c0_8, %c0_9] : memref<1x256xf32, #tpu.memory_space<vmem>>, vector<1x256xf32>
    %10 = vector.broadcast %9 : vector<1x256xf32> to vector<16x256xf32>
    %11 = arith.addf %8, %10 : vector<16x256xf32>
    %cst_10 = arith.constant 0.000000e+00 : f32
    %12 = vector.broadcast %cst_10 : f32 to vector<16x256xf32>
    %13 = arith.maximumf %11, %12 : vector<16x256xf32>
    %14 = arith.truncf %13 : vector<16x256xf32> to vector<16x256xbf16>
    %c0_11 = arith.constant 0 : index
    %c0_12 = arith.constant 0 : index
    %15 = vector.load %arg6[%c0_11, %c0_12] : memref<256x128xbf16, #tpu.memory_space<vmem>>, vector<256x128xbf16>
    %cst_13 = arith.constant dense<0.000000e+00> : vector<16x128xf32>
    %16 = tpu.matmul %14, %15, %cst_13 {dimension_numbers = #tpu.dot_dimension_numbers<[1], [0], [0], [1], [0, 0, 1, 1], [], []>} : vector<16x256xbf16>, vector<256x128xbf16>, vector<16x128xf32> -> vector<16x128xf32>
    %c0_14 = arith.constant 0 : index
    %c0_15 = arith.constant 0 : index
    %17 = vector.load %arg7[%c0_14, %c0_15] : memref<1x128xf32, #tpu.memory_space<vmem>>, vector<1x128xf32>
    %18 = vector.broadcast %17 : vector<1x128xf32> to vector<16x128xf32>
    %19 = arith.addf %16, %18 : vector<16x128xf32>
    %20 = arith.truncf %19 : vector<16x128xf32> to vector<16x128xbf16>
    %c0_16 = arith.constant 0 : index
    %c0_17 = arith.constant 0 : index
    %21 = vector.load %arg8[%c0_16, %c0_17] : memref<16x128xbf16, #tpu.memory_space<vmem>>, vector<16x128xbf16>
    tpu.vector_store %arg8[%c0_16, %c0_17], %20 {strides = array<i32>} : memref<16x128xbf16, #tpu.memory_space<vmem>>, vector<16x128xbf16>,
    return
  }
  func.func @transform_0(%arg0: i32) -> (i32, i32) {
    %c0_i32 = arith.constant 0 : i32
    %c0_i32_0 = arith.constant 0 : i32
    return %arg0, %c0_i32 : i32, i32
  }
  func.func @transform_1(%arg0: i32) -> (i32, i32) {
    %c0_i32 = arith.constant 0 : i32
    %c0_i32_0 = arith.constant 0 : i32
    return %arg0, %c0_i32 : i32, i32
  }
  func.func @transform_2(%arg0: i32) -> (i32, i32) {
    %c0_i32 = arith.constant 0 : i32
    %c0_i32_0 = arith.constant 0 : i32
    %c0_i32_1 = arith.constant 0 : i32
    return %c0_i32, %c0_i32_0 : i32, i32
  }
  func.func @transform_3(%arg0: i32) -> (i32, i32) {
    %c0_i32 = arith.constant 0 : i32
    %c0_i32_0 = arith.constant 0 : i32
    %c0_i32_1 = arith.constant 0 : i32
    return %c0_i32, %c0_i32_0 : i32, i32
  }
  func.func @transform_4(%arg0: i32) -> (i32, i32) {
    %c0_i32 = arith.constant 0 : i32
    %c0_i32_0 = arith.constant 0 : i32
    %c0_i32_1 = arith.constant 0 : i32
    return %c0_i32, %c0_i32_0 : i32, i32
  }
  func.func @transform_5(%arg0: i32) -> (i32, i32) {
    %c0_i32 = arith.constant 0 : i32
    %c0_i32_0 = arith.constant 0 : i32
    %c0_i32_1 = arith.constant 0 : i32
    return %c0_i32, %c0_i32_0 : i32, i32
  }
  func.func @transform_6(%arg0: i32) -> (i32, i32) {
    %c0_i32 = arith.constant 0 : i32
    %c0_i32_0 = arith.constant 0 : i32
    %c0_i32_1 = arith.constant 0 : i32
    return %c0_i32, %c0_i32_0 : i32, i32
  }
  func.func @transform_7(%arg0: i32) -> (i32, i32) {
    %c0_i32 = arith.constant 0 : i32
    %c0_i32_0 = arith.constant 0 : i32
    return %arg0, %c0_i32 : i32, i32
  }
}

</mosaic_0001>

<bundles_post_ra>
// kernel: classifier_forward.1
= control target key start
LH: loop header
LB: loop body
LE: loop exit
PB: predicated region body
PF: predicated region fallthrough
CT: control target
= control target key end

     0   :  { %12 = vsyncpa [#allocation3], 0  ;;  %s1678_s0 = inlined_call_operand.hbm [shape: f32[8,384], index: 0, kind: input, shape index: {}]   ;;  %s1679_s1 = inlined_call_operand.hbm [shape: f32[8,384], index: 1, kind: input, shape index: {}]   ;;  %s1680_s2 = inlined_call_operand.hbm [shape: bf16[384,256], index: 2, kind: input, shape index: {}]   ;;  %s1681_s3 = inlined_call_operand.hbm [shape: bf16[384,256], index: 3, kind: input, shape index: {}]   ;;  %s1682_s4 = inlined_call_operand.vmem [shape: f32[1,256], index: 4, kind: input, shape index: {}]   ;;  %s1683_s5 = inlined_call_operand.hbm [shape: bf16[256,128], index: 5, kind: input, shape index: {}]   ;;  %s1684_s6 = inlined_call_operand.vmem [shape: f32[1,128], index: 6, kind: input, shape index: {}]   ;;  %s1685_s7 = inlined_call_operand.vmem [shape: bf16[8,128], index: 7, kind: output, shape index: {}]  }
   0x1   :  { %13 = vsyncpa [#allocation5], 0 }
   0x2   :  { %14 = vsyncpa [#allocation8], 0 }
   0x3   :  { %19 = vsyncadd [#allocation3], 384  ;;  %s1555_s24 = smov [#allocation2]   ;;  %s1439_s28 = scalar_lea.hbm %s1678_s0, 384 }
   0x4   :  { %s20_s25 = sshll.u32 %s1555_s24, 4  ;;  %p1440_p0 = scmp.ne.s32.totalorder %s1678_s0, %s1439_s28  ;;  %s21_s25 = int_to_ptr.vmem [resolvable:$true] %s20_s25 }
   0x5   :  { %p1443_p1 = scmp.lt.u32.totalorder %s1439_s28, %s1678_s0 }
   0x7   :  { %p1445_p2 = pnand %p1443_p1, %p1440_p0 }
   0x9   :  { %1448 = shalt.err (!%p1445_p2)
}
   0xa   :  { %s1449_s10 = scalar_lea.vmem %s21_s25, 384  ;;  %s1453_s11 = scalar_lea.vmem %s21_s25, 768 }
   0xb   :  { %p1450_p3 = scmp.ne.s32.totalorder %s21_s25, %s1449_s10  ;;  %p1454_p4 = scmp.lt.s32.totalorder %s21_s25, %s21_s25 }
   0xc   :  { %p1455_p5 = scmp.lt.s32.totalorder %s1453_s11, %s1449_s10 }
   0xe   :  { %p1456_p6 = por %p1455_p5, %p1454_p4 }
  0x10   :  { %p1457_p7 = pnand %p1456_p6, %p1450_p3 }
  0x12   :  { %1460 = shalt.err (!%p1457_p7)
}
  0x13   :  { %s1556_s12 = smov 384   ;;  %s1557_s13 = smov 24  }
  0x14   :  { %26 = dma.hbm_to_vmem [thread:$0]  %s1678_s0, 384, %s21_s25, [#allocation3], %s1556_s12, %s1556_s12, %s1557_s13  }
  0x15   :  { %31 = vsyncadd [#allocation5], 384  ;;  %s1558_s16 = smov [#allocation4]   ;;  %s1461_s20 = scalar_lea.hbm %s1679_s1, 384 }
  0x16   :  { %s32_s17 = sshll.u32 %s1558_s16, 4  ;;  %p1462_p8 = scmp.ne.s32.totalorder %s1679_s1, %s1461_s20  ;;  %s33_s17 = int_to_ptr.vmem [resolvable:$true] %s32_s17 }
  0x17   :  { %p1465_p9 = scmp.lt.u32.totalorder %s1461_s20, %s1679_s1 }
  0x19   :  { %p1467_p10 = pnand %p1465_p9, %p1462_p8 }
  0x1b   :  { %1470 = shalt.err (!%p1467_p10)
}
  0x1c   :  { %s1471_s26 = scalar_lea.vmem %s33_s17, 384  ;;  %s1475_s0 = scalar_lea.vmem %s33_s17, 768 }
  0x1d   :  { %p1472_p11 = scmp.ne.s32.totalorder %s33_s17, %s1471_s26  ;;  %p1476_p12 = scmp.lt.s32.totalorder %s33_s17, %s33_s17 }
  0x1e   :  { %p1477_p13 = scmp.lt.s32.totalorder %s1475_s0, %s1471_s26 }
  0x20   :  { %p1478_p0 = por %p1477_p13, %p1476_p12 }
  0x22   :  { %p1479_p1 = pnand %p1478_p0, %p1472_p11 }
  0x24   :  { %1482 = shalt.err (!%p1479_p1)
}
  0x25   :  { %38 = dma.hbm_to_vmem [thread:$0]  %s1679_s1, 384, %s33_s17, [#allocation5], %s1556_s12, %s1556_s12, %s1557_s13  }
  0x26   :  { %s1559_s28 = smov [#allocation7]   ;;  %s1560_s30 = smov [#allocation6]  }
  0x27   :  { %s56_s29 = sshll.u32 %s1559_s28, 4  ;;  %s44_s8 = sshll.u32 %s1560_s30, 4  ;;  %s57_s29 = int_to_ptr.vmem [resolvable:$true] %s56_s29  ;;  %s45_s8 = int_to_ptr.vmem [resolvable:$true] %s44_s8 }
  0x28   :  { %s1483_s11 = scalar_lea.hbm %s1681_s3, 6144 }
  0x29   :  { %p1484_p2 = scmp.ne.s32.totalorder %s1681_s3, %s1483_s11  ;;  %p1487_p3 = scmp.lt.u32.totalorder %s1483_s11, %s1681_s3 }
  0x2b   :  { %p1489_p4 = pnand %p1487_p3, %p1484_p2 }
  0x2d   :  { %1492 = shalt.err (!%p1489_p4)
}
  0x2e   :  { %s1493_s1 = scalar_lea.vmem %s57_s29, 6144  ;;  %p1498_p6 = scmp.lt.s32.totalorder %s57_s29, %s57_s29 }
  0x2f   :  { %p1494_p5 = scmp.ne.s32.totalorder %s57_s29, %s1493_s1  ;;  %p1499_p7 = scmp.lt.s32.totalorder %s1493_s1, %s1493_s1 }
  0x31   :  { %p1500_p8 = por %p1499_p7, %p1498_p6 }
  0x33   :  { %p1501_p9 = pnand %p1500_p8, %p1494_p5 }
  0x35   :  { %1504 = shalt.err (!%p1501_p9)
}
  0x36   :  { %s1561_s12 = smov 128   ;;  %s1562_s13 = smov 8  }
  0x37   :  { %62 = dma.hbm_to_vmem [thread:$0]  %s1681_s3, 6144, %s57_s29, [#allocation8], %s1561_s12, %s1561_s12, %s1562_s13  }
  0x38   :  { %s1505_s22 = scalar_lea.hbm %s1680_s2, 6144 }
  0x39   :  { %p1506_p10 = scmp.ne.s32.totalorder %s1680_s2, %s1505_s22  ;;  %p1509_p11 = scmp.lt.u32.totalorder %s1505_s22, %s1680_s2 }
  0x3b   :  { %p1511_p12 = pnand %p1509_p11, %p1506_p10 }
  0x3d   :  { %1514 = shalt.err (!%p1511_p12)
}
  0x3e   :  { %s1515_s25 = scalar_lea.vmem %s45_s8, 6144  ;;  %p1520_p0 = scmp.lt.s32.totalorder %s45_s8, %s45_s8 }
  0x3f   :  { %p1516_p13 = scmp.ne.s32.totalorder %s45_s8, %s1515_s25  ;;  %p1521_p1 = scmp.lt.s32.totalorder %s1515_s25, %s1515_s25 }
  0x41   :  { %p1522_p2 = por %p1521_p1, %p1520_p0 }
  0x43   :  { %p1523_p3 = pnand %p1522_p2, %p1516_p13 }
  0x45   :  { %1526 = shalt.err (!%p1523_p3)
}
  0x46   :  { %50 = dma.hbm_to_vmem [thread:$0]  %s1680_s2, 6144, %s45_s8, [#allocation5], %s1561_s12, %s1561_s12, %s1562_s13  }
  0x47   :  { %s1563_s28 = smov [#allocation9]   ;;  %s1527_s10 = scalar_lea.hbm %s1683_s5, 2048 }
  0x48   :  { %s70_s29 = sshll.u32 %s1563_s28, 4  ;;  %p1528_p4 = scmp.ne.s32.totalorder %s1683_s5, %s1527_s10  ;;  %s71_s29 = int_to_ptr.vmem [resolvable:$true] %s70_s29 }
  0x49   :  { %p1531_p5 = scmp.lt.u32.totalorder %s1527_s10, %s1683_s5 }
  0x4b   :  { %p1533_p6 = pnand %p1531_p5, %p1528_p4 }
  0x4d   :  { %1536 = shalt.err (!%p1533_p6)
}
  0x4e   :  { %s1537_s18 = scalar_lea.vmem %s71_s29, 2048  ;;  %p1542_p8 = scmp.lt.s32.totalorder %s71_s29, %s71_s29 }
  0x4f   :  { %p1538_p7 = scmp.ne.s32.totalorder %s71_s29, %s1537_s18  ;;  %p1543_p9 = scmp.lt.s32.totalorder %s1537_s18, %s1537_s18 }
  0x51   :  { %p1544_p10 = por %p1543_p9, %p1542_p8 }
  0x53   :  { %p1545_p11 = pnand %p1544_p10, %p1538_p7 }
  0x55   :  { %1548 = shalt.err (!%p1545_p11)
}
  0x56   :  { %s1564_s2 = smov 64   ;;  %s1565_s8 = smov 4  }
  0x57   :  { %76 = dma.hbm_to_vmem [thread:$0]  %s1683_s5, 2048, %s71_s29, [#allocation8], %s1564_s2, %s1564_s2, %s1565_s8  }
  0x58   :  { %1549 = dma.done.wait [#allocation3], 768  }
  0x59   :  { %1550 = vsyncadd [#allocation3], 4294966528 }
  0x5a   :  { %1551 = dma.done.wait [#allocation5], 6912  }
  0x5b   :  { %1552 = vsyncadd [#allocation5], 4294960384 }
  0x5c   :  { %1553 = dma.done.wait [#allocation8], 8192  }
  0x5d   :  { %1554 = vsyncadd [#allocation8], 4294959104  ;;  %v1566_v0 = vmov 0   ;;  %v1279_v1 = vld [vmem:[#allocation7 + $0x104] ss:$8 sps:$4 sm:$0xff]   ;;  %v109_v22 = vld [vmem:[#allocation4 + $0x28] sm:$0xff] }
  0x5e   :  { %524 = vmatprep.mubr.bf16.mxu0 %v1566_v0  ;;  %v1281_v2 = vld [vmem:[#allocation7 + $0x100] ss:$8 sps:$4 sm:$0xff]   ;;  %492 = vmatprep.subr.bf16.mxu0 %v1279_v1  ;;  %v1282_v3 = vld [vmem:[#allocation7 + $0x114] ss:$8 sps:$4 sm:$0xff]   ;;  %v1284_v4 = vld [vmem:[#allocation7 + $0x110] ss:$8 sps:$4 sm:$0xff]  }
  0x5f   :  { %493 = vmatpush1.bf16.msra.mxu0 %v1281_v2  ;;  %v1285_v5 = vld [vmem:[#allocation7 + $0x124] ss:$8 sps:$4 sm:$0xff]   ;;  %v1287_v6 = vld [vmem:[#allocation7 + $0x120] ss:$8 sps:$4 sm:$0xff]   ;;  %v1288_v7 = vld [vmem:[#allocation7 + $0x134] ss:$8 sps:$4 sm:$0xff]  }
  0x60   :  { %494 = vmatprep.subr.bf16.mxu0 %v1282_v3  ;;  %v1290_v8 = vld [vmem:[#allocation7 + $0x130] ss:$8 sps:$4 sm:$0xff]   ;;  %v1291_v9 = vld [vmem:[#allocation7 + $0x144] ss:$8 sps:$4 sm:$0xff]   ;;  %v1293_v10 = vld [vmem:[#allocation7 + $0x140] ss:$8 sps:$4 sm:$0xff]  }
  0x61   :  { %v1294_v11 = vld [vmem:[#allocation7 + $0x154] ss:$8 sps:$4 sm:$0xff]   ;;  %v1296_v12 = vld [vmem:[#allocation7 + $0x150] ss:$8 sps:$4 sm:$0xff]   ;;  %v1297_v13 = vld [vmem:[#allocation7 + $0x164] ss:$8 sps:$4 sm:$0xff]  }
  0x62   :  { %v1299_v14 = vld [vmem:[#allocation7 + $0x160] ss:$8 sps:$4 sm:$0xff]   ;;  %v1327_v15 = vld [vmem:[#allocation7 + $0x4] ss:$8 sps:$4 sm:$0xff]   ;;  %v1300_v17 = vld [vmem:[#allocation7 + $0x174] ss:$8 sps:$4 sm:$0xff]  }
  0x63   :  { %495 = vmatpush1.bf16.msra.mxu0 %v1284_v4  ;;  %v1329_v16 = vld [vmem:[#allocation7] ss:$8 sps:$4 sm:$0xff]   ;;  %449 = vmatprep.subr.bf16.mxu1 %v1327_v15  ;;  %v1302_v18 = vld [vmem:[#allocation7 + $0x170] ss:$8 sps:$4 sm:$0xff]   ;;  %v1333_v19 = vld [vmem:[#allocation7 + $0x14] ss:$8 sps:$4 sm:$0xff]  }
  0x64   :  { %496 = vmatprep.subr.bf16.mxu0 %v1285_v5  ;;  %450 = vmatpush1.bf16.msra.mxu1 %v1329_v16  ;;  %v1335_v20 = vld [vmem:[#allocation7 + $0x10] ss:$8 sps:$4 sm:$0xff]   ;;  %v106_v21 = vld [vmem:[#allocation4 + $0x10] sm:$0xff]  ;;  %v1345_v27 = vld [vmem:[#allocation7 + $0x34] ss:$8 sps:$4 sm:$0xff]  }
  0x65   :  { %451 = vmatprep.subr.bf16.mxu1 %v1333_v19  ;;  %v1305_v23 = vld [vmem:[#allocation6 + $0x4] ss:$8 sps:$4 sm:$0xff]   ;;  %v1341_v25 = vld [vmem:[#allocation7 + $0x20] ss:$8 sps:$4 sm:$0xff]   ;;  %v112_v26 = vpack.c.bf16 %v109_v22, %v106_v21  ;;  %v1308_v29 = vld [vmem:[#allocation6 + $0x14] ss:$8 sps:$4 sm:$0xff]  }
  0x66   :  { %v1339_v24 = vld [vmem:[#allocation7 + $0x24] ss:$8 sps:$4 sm:$0xff]   ;;  %v1303_v28 = vld [vmem:[#allocation6] ss:$8 sps:$4 sm:$0xff]   ;;  %v1347_v30 = vld [vmem:[#allocation7 + $0x30] ss:$8 sps:$4 sm:$0xff]  }
  0x67   :  { %497 = vmatpush1.bf16.msra.mxu0 %v1287_v6  ;;  %v1351_v31 = vld [vmem:[#allocation7 + $0x44] ss:$8 sps:$4 sm:$0xff]   ;;  %v1306_v32 = vld [vmem:[#allocation6 + $0x10] ss:$8 sps:$4 sm:$0xff]   ;;  %v1353_v34 = vld [vmem:[#allocation7 + $0x40] ss:$8 sps:$4 sm:$0xff]  }
  0x68   :  { %498 = vmatprep.subr.bf16.mxu0 %v1288_v7  ;;  %452 = vmatpush1.bf16.msra.mxu1 %v1335_v20  ;;  %v1311_v33 = vld [vmem:[#allocation6 + $0x24] ss:$8 sps:$4 sm:$0xff]   ;;  %v1357_v35 = vld [vmem:[#allocation7 + $0x54] ss:$8 sps:$4 sm:$0xff]   ;;  %v1309_v36 = vld [vmem:[#allocation6 + $0x20] ss:$8 sps:$4 sm:$0xff]  }
  0x69   :  { %453 = vmatprep.subr.bf16.mxu1 %v1339_v24  ;;  %v1314_v37 = vld [vmem:[#allocation6 + $0x34] ss:$8 sps:$4 sm:$0xff]   ;;  %v1359_v38 = vld [vmem:[#allocation7 + $0x50] ss:$8 sps:$4 sm:$0xff]   ;;  %v1363_v39 = vld [vmem:[#allocation7 + $0x64] ss:$8 sps:$4 sm:$0xff]  }
  0x6a   :  { %v1312_v40 = vld [vmem:[#allocation6 + $0x30] ss:$8 sps:$4 sm:$0xff]   ;;  %v1317_v41 = vld [vmem:[#allocation6 + $0x44] ss:$8 sps:$4 sm:$0xff]   ;;  %v1365_v42 = vld [vmem:[#allocation7 + $0x60] ss:$8 sps:$4 sm:$0xff]  }
  0x6b   :  { %499 = vmatpush1.bf16.msra.mxu0 %v1290_v8  ;;  %v96_v43 = vld [vmem:[#allocation2 + $0x8] sm:$0xff]  ;;  %v99_v44 = vld [vmem:[#allocation2 + $0x20] sm:$0xff]  ;;  %v1369_v45 = vld [vmem:[#allocation7 + $0x74] ss:$8 sps:$4 sm:$0xff]  }
  0x6c   :  { %500 = vmatprep.subr.bf16.mxu0 %v1291_v9  ;;  %454 = vmatpush1.bf16.msra.mxu1 %v1341_v25  ;;  %v102_v46 = vpack.c.bf16 %v99_v44, %v96_v43  ;;  %v1315_v47 = vld [vmem:[#allocation6 + $0x40] ss:$8 sps:$4 sm:$0xff]   ;;  %v1320_v48 = vld [vmem:[#allocation6 + $0x54] ss:$8 sps:$4 sm:$0xff]   ;;  %v1371_v49 = vld [vmem:[#allocation7 + $0x70] ss:$8 sps:$4 sm:$0xff]  }
  0x6d   :  { %455 = vmatprep.subr.bf16.mxu1 %v1345_v27  ;;  %v1375_v50 = vld [vmem:[#allocation7 + $0x84] ss:$8 sps:$4 sm:$0xff]   ;;  %v1318_v51 = vld [vmem:[#allocation6 + $0x50] ss:$8 sps:$4 sm:$0xff]   ;;  %v1377_v53 = vld [vmem:[#allocation7 + $0x80] ss:$8 sps:$4 sm:$0xff]  }
  0x6e   :  { %v1323_v52 = vld [vmem:[#allocation6 + $0x64] ss:$8 sps:$4 sm:$0xff]   ;;  %v1381_v54 = vld [vmem:[#allocation7 + $0x94] ss:$8 sps:$4 sm:$0xff]   ;;  %v1321_v55 = vld [vmem:[#allocation6 + $0x60] ss:$8 sps:$4 sm:$0xff]  }
  0x6f   :  { %501 = vmatpush1.bf16.msra.mxu0 %v1293_v10  ;;  %v1326_v56 = vld [vmem:[#allocation6 + $0x74] ss:$8 sps:$4 sm:$0xff]   ;;  %v1383_v57 = vld [vmem:[#allocation7 + $0x90] ss:$8 sps:$4 sm:$0xff]   ;;  %v1387_v58 = vld [vmem:[#allocation7 + $0xa4] ss:$8 sps:$4 sm:$0xff]  }
  0x70   :  { %502 = vmatprep.subr.bf16.mxu0 %v1294_v11  ;;  %456 = vmatpush1.bf16.msra.mxu1 %v1347_v30  ;;  %v1324_v59 = vld [vmem:[#allocation6 + $0x70] ss:$8 sps:$4 sm:$0xff]   ;;  %v1332_v60 = vld [vmem:[#allocation6 + $0x84] ss:$8 sps:$4 sm:$0xff]   ;;  %v1389_v61 = vld [vmem:[#allocation7 + $0xa0] ss:$8 sps:$4 sm:$0xff]  }
  0x71   :  { %457 = vmatprep.subr.bf16.mxu1 %v1351_v31  ;;  %v1393_v62 = vld [vmem:[#allocation7 + $0xb4] ss:$8 sps:$4 sm:$0xff]   ;;  %v1330_v63 = vld [vmem:[#allocation6 + $0x80] ss:$8 sps:$4 sm:$0xff]   ;;  %v1395_v2 = vld [vmem:[#allocation7 + $0xb0] ss:$8 sps:$4 sm:$0xff]  }
  0x72   :  { %v1338_v1 = vld [vmem:[#allocation6 + $0x94] ss:$8 sps:$4 sm:$0xff]   ;;  %v1399_v5 = vld [vmem:[#allocation7 + $0xc4] ss:$8 sps:$4 sm:$0xff]   ;;  %v1336_v7 = vld [vmem:[#allocation6 + $0x90] ss:$8 sps:$4 sm:$0xff]  }
  0x73   :  { %503 = vmatpush1.bf16.msra.mxu0 %v1296_v12  ;;  %v105_v3 = vld [vmem:[#allocation4 + $0x8] sm:$0xff]  ;;  %v108_v4 = vld [vmem:[#allocation4 + $0x20] sm:$0xff]  ;;  %v1344_v8 = vld [vmem:[#allocation6 + $0xa4] ss:$8 sps:$4 sm:$0xff]  }
  0x74   :  { %504 = vmatprep.subr.bf16.mxu0 %v1297_v13  ;;  %458 = vmatpush1.bf16.msra.mxu1 %v1353_v34  ;;  %v111_v6 = vpack.c.bf16 %v108_v4, %v105_v3  ;;  %v1401_v9 = vld [vmem:[#allocation7 + $0xc0] ss:$8 sps:$4 sm:$0xff]   ;;  %v1405_v10 = vld [vmem:[#allocation7 + $0xd4] ss:$8 sps:$4 sm:$0xff]   ;;  %v1348_v13 = vld [vmem:[#allocation6 + $0xb0] ss:$8 sps:$4 sm:$0xff]  }
  0x75   :  { %459 = vmatprep.subr.bf16.mxu1 %v1357_v35  ;;  %v1342_v11 = vld [vmem:[#allocation6 + $0xa0] ss:$8 sps:$4 sm:$0xff]   ;;  %v1350_v12 = vld [vmem:[#allocation6 + $0xb4] ss:$8 sps:$4 sm:$0xff]   ;;  %v1356_v15 = vld [vmem:[#allocation6 + $0xc4] ss:$8 sps:$4 sm:$0xff]  }
  0x76   :  { %481 = vmatprep.mubr.bf16.mxu1 %v111_v6  ;;  %v1411_v16 = vld [vmem:[#allocation7 + $0xe4] ss:$8 sps:$4 sm:$0xff]   ;;  %v1354_v19 = vld [vmem:[#allocation6 + $0xc0] ss:$8 sps:$4 sm:$0xff]   ;;  %v1362_v20 = vld [vmem:[#allocation6 + $0xd4] ss:$8 sps:$4 sm:$0xff]  }
  0x77   :  { %505 = vmatpush1.bf16.msra.mxu0 %v1299_v14  ;;  %v1407_v14 = vld [vmem:[#allocation7 + $0xd0] ss:$8 sps:$4 sm:$0xff]   ;;  %v1423_v24 = vld [vmem:[#allocation9 + $0x40] sm:$0xff]   ;;  %v1374_v31 = vld [vmem:[#allocation6 + $0xf4] ss:$8 sps:$4 sm:$0xff]  }
  0x78   :  { %506 = vmatprep.subr.bf16.mxu0 %v1300_v17  ;;  %460 = vmatpush1.bf16.msra.mxu1 %v1359_v38  ;;  %v1413_v17 = vld [vmem:[#allocation7 + $0xe0] ss:$8 sps:$4 sm:$0xff]   ;;  %v1419_v21 = vld [vmem:[#allocation7 + $0xf0] ss:$8 sps:$4 sm:$0xff]  }
  0x79   :  { %461 = vmatprep.subr.bf16.mxu1 %v1363_v39  ;;  %v104_v22 = vld [vmem:[#allocation4] sm:$0xff]  ;;  %v1366_v30 = vld [vmem:[#allocation6 + $0xe0] ss:$8 sps:$4 sm:$0xff]   ;;  %v1430_v43 = vld [vmem:[#allocation9 + $0x18] sm:$0xff]  }
  0x7a   :  { %v1360_v25 = vld [vmem:[#allocation6 + $0xd0] ss:$8 sps:$4 sm:$0xff]   ;;  %v95_v35 = vld [vmem:[#allocation2] sm:$0xff] }
  0x7b   :  { %507 = vmatpush1.bf16.msra.mxu0 %v1302_v18  ;;  %v1417_v18 = vld [vmem:[#allocation7 + $0xf4] ss:$8 sps:$4 sm:$0xff]   ;;  %v1372_v34 = vld [vmem:[#allocation6 + $0xf0] ss:$8 sps:$4 sm:$0xff]  }
  0x7c   :  { %775 = vmatprep.subr.bf16.mxu0 %v1305_v23  ;;  %462 = vmatpush1.bf16.msra.mxu1 %v1365_v42  ;;  %v107_v23 = vld [vmem:[#allocation4 + $0x18] sm:$0xff]  ;;  %v1428_v38 = vld [vmem:[#allocation9 + $0x10] sm:$0xff]   ;;  %v1438_v3 = vld [vmem:[#allocation9 + $0x38] sm:$0xff]  }
  0x7d   :  { %463 = vmatprep.subr.bf16.mxu1 %v1369_v45  ;;  %v110_v27 = vpack.c.bf16 %v107_v23, %v104_v22  ;;  %v1386_v42 = vld [vmem:[#allocation6 + $0x114] ss:$8 sps:$4 sm:$0xff]   ;;  %v1384_v44 = vld [vmem:[#allocation6 + $0x110] ss:$8 sps:$4 sm:$0xff]   ;;  %v1392_v45 = vld [vmem:[#allocation6 + $0x124] ss:$8 sps:$4 sm:$0xff]  }
  0x7e   :  { %525 = vmatmul.mubr.bf16.vlgmr.msra.gmra.mrb[0].mxu0 %v112_v26  ;;  %v1368_v26 = vld [vmem:[#allocation6 + $0xe4] ss:$8 sps:$4 sm:$0xff]  }
  0x7f   :  { %776 = vmatpush1.bf16.msra.mxu0 %v1303_v28  ;;  %807 = vmatprep.mubr.bf16.mxu0 %v102_v46  ;;  %v1424_v28 = vld [vmem:[#allocation9] sm:$0xff]  }
  0x80   :  { %777 = vmatprep.subr.bf16.mxu0 %v1308_v29  ;;  %464 = vmatpush1.bf16.msra.mxu1 %v1371_v49  ;;  %v1425_v29 = vld [vmem:[#allocation9 + $0x48] sm:$0xff]  }
  0x81   :  { %465 = vmatprep.subr.bf16.mxu1 %v1375_v50  ;;  %v1390_v46 = vld [vmem:[#allocation6 + $0x120] ss:$8 sps:$4 sm:$0xff]   ;;  %v1404_v49 = vld [vmem:[#allocation6 + $0x144] ss:$8 sps:$4 sm:$0xff]  }
  0x82   :  { %v1402_v50 = vld [vmem:[#allocation6 + $0x140] ss:$8 sps:$4 sm:$0xff]  }
  0x83   :  { %778 = vmatpush1.bf16.msra.mxu0 %v1306_v32  ;;  %v1426_v32 = vld [vmem:[#allocation9 + $0x8] sm:$0xff]  }
  0x84   :  { %779 = vmatprep.subr.bf16.mxu0 %v1311_v33  ;;  %466 = vmatpush1.bf16.msra.mxu1 %v1377_v53  ;;  %v1427_v33 = vld [vmem:[#allocation9 + $0x50] sm:$0xff]   ;;  %v1416_v53 = vld [vmem:[#allocation6 + $0x164] ss:$8 sps:$4 sm:$0xff]  }
  0x85   :  { %467 = vmatprep.subr.bf16.mxu1 %v1381_v54  ;;  %v1422_v54 = vld [vmem:[#allocation6 + $0x174] ss:$8 sps:$4 sm:$0xff]  }
  0x87   :  { %780 = vmatpush1.bf16.msra.mxu0 %v1309_v36  ;;  %v98_v36 = vld [vmem:[#allocation2 + $0x18] sm:$0xff] }
  0x88   :  { %781 = vmatprep.subr.bf16.mxu0 %v1314_v37  ;;  %468 = vmatpush1.bf16.msra.mxu1 %v1383_v57  ;;  %v1380_v37 = vld [vmem:[#allocation6 + $0x104] ss:$8 sps:$4 sm:$0xff]   ;;  %v101_v39 = vpack.c.bf16 %v98_v36, %v95_v35 }
  0x89   :  { %469 = vmatprep.subr.bf16.mxu1 %v1387_v58  ;;  %v100_v57 = vld [vmem:[#allocation2 + $0x28] sm:$0xff] }
  0x8b   :  { %782 = vmatpush1.bf16.msra.mxu0 %v1312_v40  ;;  %v1429_v40 = vld [vmem:[#allocation9 + $0x58] sm:$0xff]  }
  0x8c   :  { %783 = vmatprep.subr.bf16.mxu0 %v1317_v41  ;;  %470 = vmatpush1.bf16.msra.mxu1 %v1389_v61  ;;  %v1378_v41 = vld [vmem:[#allocation6 + $0x100] ss:$8 sps:$4 sm:$0xff]  }
  0x8d   :  { %471 = vmatprep.subr.bf16.mxu1 %v1393_v62  ;;  %v1433_v61 = vld [vmem:[#allocation9 + $0x68] sm:$0xff]  }
  0x8e   :  { %v1434_v62 = vld [vmem:[#allocation9 + $0x28] sm:$0xff]  }
  0x8f   :  { %784 = vmatpush1.bf16.msra.mxu0 %v1315_v47  ;;  %v1398_v47 = vld [vmem:[#allocation6 + $0x134] ss:$8 sps:$4 sm:$0xff]  }
  0x90   :  { %785 = vmatprep.subr.bf16.mxu0 %v1320_v48  ;;  %472 = vmatpush1.bf16.msra.mxu1 %v1395_v2  ;;  %v1396_v48 = vld [vmem:[#allocation6 + $0x130] ss:$8 sps:$4 sm:$0xff]  }
  0x91   :  { %473 = vmatprep.subr.bf16.mxu1 %v1399_v5  ;;  %v1437_v2 = vld [vmem:[#allocation9 + $0x78] sm:$0xff]  }
  0x93   :  { %786 = vmatpush1.bf16.msra.mxu0 %v1318_v51  ;;  %v1410_v51 = vld [vmem:[#allocation6 + $0x154] ss:$8 sps:$4 sm:$0xff]  }
  0x94   :  { %787 = vmatprep.subr.bf16.mxu0 %v1323_v52  ;;  %474 = vmatpush1.bf16.msra.mxu1 %v1401_v9  ;;  %v1408_v52 = vld [vmem:[#allocation6 + $0x150] ss:$8 sps:$4 sm:$0xff]  }
  0x95   :  { %475 = vmatprep.subr.bf16.mxu1 %v1405_v10 }
  0x97   :  { %788 = vmatpush1.bf16.msra.mxu0 %v1321_v55  ;;  %v1420_v55 = vld [vmem:[#allocation6 + $0x170] ss:$8 sps:$4 sm:$0xff]  }
  0x98   :  { %789 = vmatprep.subr.bf16.mxu0 %v1326_v56  ;;  %476 = vmatpush1.bf16.msra.mxu1 %v1407_v14  ;;  %v97_v56 = vld [vmem:[#allocation2 + $0x10] sm:$0xff] }
  0x99   :  { %477 = vmatprep.subr.bf16.mxu1 %v1411_v16  ;;  %v103_v58 = vpack.c.bf16 %v100_v57, %v97_v56 }
  0x9b   :  { %790 = vmatpush1.bf16.msra.mxu0 %v1324_v59  ;;  %v1431_v59 = vld [vmem:[#allocation9 + $0x60] sm:$0xff]  }
  0x9c   :  { %791 = vmatprep.subr.bf16.mxu0 %v1332_v60  ;;  %478 = vmatpush1.bf16.msra.mxu1 %v1413_v17  ;;  %v1432_v60 = vld [vmem:[#allocation9 + $0x20] sm:$0xff]  }
  0x9d   :  { %479 = vmatprep.subr.bf16.mxu1 %v1417_v18 }
  0x9f   :  { %792 = vmatpush1.bf16.msra.mxu0 %v1330_v63  ;;  %v1435_v63 = vld [vmem:[#allocation9 + $0x70] sm:$0xff]  }
  0xa0   :  { %793 = vmatprep.subr.bf16.mxu0 %v1338_v1  ;;  %480 = vmatpush1.bf16.msra.mxu1 %v1419_v21  ;;  %v1436_v1 = vld [vmem:[#allocation9 + $0x30] sm:$0xff]  }
  0xa1   :  { %1233 = vmatprep.subr.bf16.mxu1 %v1423_v24 }
  0xa3   :  { %794 = vmatpush1.bf16.msra.mxu0 %v1336_v7  ;;  %482 = vmatmul.mubr.bf16.vlgmr.msra.gmra.mrb[0].mxu1 %v110_v27 }
  0xa4   :  { %795 = vmatprep.subr.bf16.mxu0 %v1344_v8  ;;  %1234 = vmatpush3.bf16.msra.mxu1 %v1424_v28  ;;  %v863_v8 = vlaneseq }
  0xa5   :  { %1235 = vmatprep.subr.bf16.mxu1 %v1425_v29 }
  0xa6   :  { %v864_v9 = vshrl.u32 %v863_v8, 7 }
  0xa7   :  { %796 = vmatpush1.bf16.msra.mxu0 %v1342_v11  ;;  %v861_v11 = vld [vmem:[%s1682_s4] sm:$0x3] }
  0xa8   :  { %797 = vmatprep.subr.bf16.mxu0 %v1350_v12  ;;  %1236 = vmatpush3.bf16.msra.mxu1 %v1426_v32  ;;  %v865_v10 = vsub.s32 0, %v864_v9  ;;  %v869_v12 = vsub.s32 1, %v864_v9 }
  0xa9   :  { %1237 = vmatprep.subr.bf16.mxu1 %v1427_v33 }
  0xab   :  { %798 = vmatpush1.bf16.msra.mxu0 %v1348_v13  ;;  %v866_v13 = vrot.slane %v861_v11, %v865_v10 }
  0xac   :  { %799 = vmatprep.subr.bf16.mxu0 %v1356_v15  ;;  %1238 = vmatpush3.bf16.msra.mxu1 %v1428_v38  ;;  %v870_v15 = vrot.slane %v861_v11, %v869_v12 }
  0xad   :  { %1239 = vmatprep.subr.bf16.mxu1 %v1429_v40 }
  0xaf   :  { %800 = vmatpush1.bf16.msra.mxu0 %v1354_v19 }
  0xb0   :  { %801 = vmatprep.subr.bf16.mxu0 %v1362_v20  ;;  %1240 = vmatpush3.bf16.msra.mxu1 %v1430_v43 }
  0xb1   :  { %1241 = vmatprep.subr.bf16.mxu1 %v1431_v59 }
  0xb3   :  { %802 = vmatpush1.bf16.msra.mxu0 %v1360_v25 }
  0xb4   :  { %803 = vmatprep.subr.bf16.mxu0 %v1368_v26  ;;  %1242 = vmatpush3.bf16.msra.mxu1 %v1432_v60 }
  0xb5   :  { %1243 = vmatprep.subr.bf16.mxu1 %v1433_v61 }
  0xb7   :  { %804 = vmatpush1.bf16.msra.mxu0 %v1366_v30 }
  0xb8   :  { %805 = vmatprep.subr.bf16.mxu0 %v1374_v31  ;;  %1244 = vmatpush3.bf16.msra.mxu1 %v1434_v62 }
  0xb9   :  { %1245 = vmatprep.subr.bf16.mxu1 %v1435_v63 }
  0xbb   :  { %806 = vmatpush1.bf16.msra.mxu0 %v1372_v34 }
  0xbc   :  { %818 = vmatprep.subr.bf16.mxu0 %v1380_v37  ;;  %1246 = vmatpush3.bf16.msra.mxu1 %v1436_v1  ;;  %v1207_v37 = vld [vmem:[%s1684_s6] ss:$0 sm:$0xff] }
  0xbd   :  { %1247 = vmatprep.subr.bf16.mxu1 %v1437_v2 }
  0xbe   :  { %808 = vmatmul.mubr.bf16.vlgmr.msra.gmra.mrb[0].mxu0 %v101_v39 }
  0xbf   :  { %819 = vmatpush1.bf16.msra.mxu0 %v1378_v41  ;;  %850 = vmatprep.mubr.bf16.mxu0 %v1566_v0  ;;  %v1414_v0 = vld [vmem:[#allocation6 + $0x160] ss:$8 sps:$4 sm:$0xff]  }
  0xc0   :  { %820 = vmatprep.subr.bf16.mxu0 %v1386_v42  ;;  %1248 = vmatpush3.bf16.msra.mxu1 %v1438_v3 }
  0xc3   :  { %821 = vmatpush1.bf16.msra.mxu0 %v1384_v44 }
  0xc4   :  { %822 = vmatprep.subr.bf16.mxu0 %v1392_v45 }
  0xc7   :  { %823 = vmatpush1.bf16.msra.mxu0 %v1390_v46 }
  0xc8   :  { %824 = vmatprep.subr.bf16.mxu0 %v1398_v47 }
  0xcb   :  { %825 = vmatpush1.bf16.msra.mxu0 %v1396_v48 }
  0xcc   :  { %826 = vmatprep.subr.bf16.mxu0 %v1404_v49 }
  0xcf   :  { %827 = vmatpush1.bf16.msra.mxu0 %v1402_v50 }
  0xd0   :  { %828 = vmatprep.subr.bf16.mxu0 %v1410_v51 }
  0xd3   :  { %829 = vmatpush1.bf16.msra.mxu0 %v1408_v52 }
  0xd4   :  { %830 = vmatprep.subr.bf16.mxu0 %v1416_v53 }
  0xd7   :  { %831 = vmatpush1.bf16.msra.mxu0 %v1414_v0 }
  0xd8   :  { %832 = vmatprep.subr.bf16.mxu0 %v1422_v54 }
  0xdb   :  { %833 = vmatpush1.bf16.msra.mxu0 %v1420_v55 }
  0xde   :  { %851 = vmatmul.mubr.bf16.vlgmr.msra.gmra.mrb[0].mxu0 %v103_v58 }
 0x176   :  { %v483_v4 = vpop.f32.mrb[0].mxu1 }
 0x177   :  { %v485_v5 = vpop.f32.mrb[1].mxu1 }
 0x178   :  { %v487_v6 = vpop.f32.mrb[2].mxu1 }
 0x179   :  { %v489_v7 = vpop.f32.mrb[3].mxu1 }
 0x1b1   :  { %v852_v14 = vpop.f32.mrb[0].mxu0 }
 0x1b2   :  { %v1255_v16 = vadd.f32 %v852_v14, %v483_v4  ;;  %v854_v17 = vpop.f32.mrb[1].mxu0 }
 0x1b3   :  { %v1256_v18 = vadd.f32 %v854_v17, %v485_v5  ;;  %v856_v19 = vpop.f32.mrb[2].mxu0 }
 0x1b4   :  { %v873_v20 = vadd.f32 %v1255_v16, %v866_v13  ;;  %v1257_v21 = vadd.f32 %v856_v19, %v487_v6  ;;  %v858_v22 = vpop.f32.mrb[3].mxu0 }
 0x1b5   :  { %v874_v23 = vadd.f32 %v1256_v18, %v870_v15  ;;  %v1258_v24 = vadd.f32 %v858_v22, %v489_v7 }
 0x1b6   :  { %v875_v25 = vadd.f32 %v1257_v21, %v866_v13  ;;  %v877_v27 = vmax.f32 %v873_v20, 0.0 }
 0x1b7   :  { %v876_v26 = vadd.f32 %v1258_v24, %v870_v15  ;;  %v878_v29 = vmax.f32 %v874_v23, 0.0 }
 0x1b8   :  { %v879_v28 = vmax.f32 %v875_v25, 0.0 }
 0x1b9   :  { %v880_v30 = vmax.f32 %v876_v26, 0.0 }
 0x1ba   :  { %v881_v31 = vpack.c.bf16 %v879_v28, %v877_v27 }
 0x1bb   :  { %v882_v32 = vpack.c.bf16 %v880_v30, %v878_v29 }
 0x1bd   :  { %1050 = vmatprep.mubr.bf16.mxu1 %v882_v32 }
 0x1be   :  { %1051 = vmatmul.mubr.bf16.vlgmr.msra.gmra.mrb[4].mxu1 %v881_v31 }
 0x291   :  { %v1249_v33 = vpop.f32.mrb[4].mxu1 }
 0x292   :  { %v1250_v34 = vpop.f32.mrb[5].mxu1 }
 0x293   :  { %v1251_v35 = vadd.f32 %v1250_v34, %v1249_v33  ;;  %v1252_v36 = vpop.f32.mrb[6].mxu1 }
 0x294   :  { %v1253_v38 = vpop.f32.mrb[7].mxu1 }
 0x295   :  { %v1254_v39 = vadd.f32 %v1253_v38, %v1252_v36  ;;  %v1053_v40 = vadd.f32 %v1251_v35, %v1207_v37 }
 0x297   :  { %v1056_v41 = vadd.f32 %v1254_v39, %v1207_v37 }
 0x299   :  { %v1231_v42 = vpack.c.bf16 %v1056_v41, %v1053_v40 }
 0x29b   :  { %1232 = vst [vmem:[#allocation10] sm:$0xff] %v1231_v42  }
 0x2a2   :  { %v1086_v43 = vld [vmem:[#allocation10] sm:$0xf] }
 0x2a3   :  { %1087 = vst [vmem:[%s1685_s7] sm:$0xf] %v1086_v43 }
 0x2a4   :  { %1104 = vsyncpa [#allocation3], 1 }
 0x2a5   :  { %1105 = vsyncpa [#allocation5], 1 }
 0x2a6   :  { %1106 = vsyncpa [#allocation8], 1 }

</bundles_post_ra>
